<compile_context>
chip_gen: v5e
topology: v5e:2x2
jax: 0.10.0
libtpu: 0.0.40
codegen_flags: <defaults>
</compile_context>

<pallas_src>
import jax
import jax.numpy as jnp
from jax.experimental import pallas as pl
from jax.experimental.pallas import tpu as pltpu


def _round_up(x, m):
    return ((x + m - 1) // m) * m


# --------------------- kernel 1: h1 = relu(SAGEConv1(x)) ----------------------
def sage_layer1_kernel(a_ref, xk_ref, xr_ref, w1_ref, b1_ref, h1_ref, acc_ref):
    k = pl.program_id(1)

    @pl.when(k == 0)
    def _():
        acc_ref[...] = jnp.zeros_like(acc_ref)

    # Mean-aggregation partial sum: A[row-tile, k-tile] @ x[k-tile]  (bf16 MXU, f32 acc)
    acc_ref[...] += jnp.dot(a_ref[...], xk_ref[...],
                            preferred_element_type=jnp.float32)

    @pl.when(k == pl.num_programs(1) - 1)
    def _():
        # Fused projection: [agg, x_root] @ [[W1_l],[W1_r]] in a single K=2*F pass.
        feats = jnp.concatenate(
            [acc_ref[...].astype(jnp.bfloat16), xr_ref[...]], axis=-1)
        h = jnp.dot(feats, w1_ref[...], preferred_element_type=jnp.float32)
        h = h + b1_ref[...]
        h1_ref[...] = jnp.maximum(h, 0.0).astype(h1_ref.dtype)


# ------------- kernel 2: out = global_mean_pool(SAGEConv2(h1)) ----------------
# Pool pushed through the (affine) second layer; reduces over node tiles.
def sage_layer2_pool_kernel(pa_ref, p_ref, h1_ref, w2_ref, b2_ref, out_ref,
                            acc_ref):
    k = pl.program_id(0)

    @pl.when(k == 0)
    def _():
        acc_ref[...] = jnp.zeros_like(acc_ref)

    h1 = h1_ref[...]                                                    # (tk, H) bf16
    agg = jnp.dot(pa_ref[...], h1, preferred_element_type=jnp.float32)  # (G, H)
    root = jnp.dot(p_ref[...], h1, preferred_element_type=jnp.float32)  # (G, H)
    acc_ref[...] += jnp.concatenate([agg, root], axis=-1)               # (G, 2H) f32

    @pl.when(k == pl.num_programs(0) - 1)
    def _():
        pooled = acc_ref[...].astype(jnp.bfloat16)
        out = jnp.dot(pooled, w2_ref[...], preferred_element_type=jnp.float32)
        out_ref[...] = out + b2_ref[...]


def graphsage_forward(x, edge_index, batch, num_graphs, params, *, tile=256):
    """Plain-JAX glue: build dense (padded, bf16) operators, run the two kernels."""
    N, f_in = x.shape
    w1l, w1r, b1, w2l, w2r, b2 = params
    hidden = w1l.shape[1]
    out_feats = w2l.shape[1]

    n_pad = _round_up(N, tile)
    f_pad = _round_up(f_in, 128)
    h_pad = _round_up(hidden, 128)
    o_pad = _round_up(out_feats, 128)
    g_pad = _round_up(num_graphs, 8)

    f32, bf16 = jnp.float32, jnp.bfloat16

    # Dense row-normalized mean-aggregation operator A (padded).
    src = edge_index[0].astype(jnp.int32)
    dst = edge_index[1].astype(jnp.int32)
    adj = jnp.zeros((n_pad, n_pad), f32).at[dst, src].add(1.0)
    deg = jnp.maximum(adj.sum(axis=1, keepdims=True), 1.0)
    a_mat = adj / deg

    # Dense mean-pool operator P (padded) and pushed-down PA = P @ A.
    onehot = (batch[None, :] == jnp.arange(g_pad)[:, None]).astype(f32)     # (g_pad, N)
    counts = jnp.maximum(onehot.sum(axis=1, keepdims=True), 1.0)
    p_mat = jnp.zeros((g_pad, n_pad), f32).at[:, :N].set(onehot / counts)
    pa_mat = p_mat @ a_mat

    # Pad features / weights; stack [W_l; W_r] so each layer is one fused matmul.
    x_p = jnp.zeros((n_pad, f_pad), f32).at[:N, :f_in].set(x)
    w1 = (jnp.zeros((2 * f_pad, h_pad), f32)
          .at[:f_in, :hidden].set(w1l)
          .at[f_pad:f_pad + f_in, :hidden].set(w1r))
    b1_p = jnp.zeros((1, h_pad), f32).at[0, :hidden].set(b1.reshape(-1))
    w2 = (jnp.zeros((2 * h_pad, o_pad), f32)
          .at[:hidden, :out_feats].set(w2l)
          .at[h_pad:h_pad + hidden, :out_feats].set(w2r))
    b2_p = jnp.zeros((1, o_pad), f32).at[0, :out_feats].set(b2.reshape(-1))

    a_bf = a_mat.astype(bf16)
    x_bf = x_p.astype(bf16)
    w1_bf = w1.astype(bf16)
    w2_bf = w2.astype(bf16)
    p_bf = p_mat.astype(bf16)
    pa_bf = pa_mat.astype(bf16)

    tm = tk = tile
    vmem_limit = 48 << 20   # safe on v7x (64 MiB physical VMEM), fine on v5e/v6e

    # --- kernel 1: h1 (row-tiled over A, reduction over A columns) ------------
    h1 = pl.pallas_call(
        sage_layer1_kernel,
        out_shape=jax.ShapeDtypeStruct((n_pad, h_pad), bf16),
        grid_spec=pltpu.PrefetchScalarGridSpec(
            num_scalar_prefetch=0,
            grid=(n_pad // tm, n_pad // tk),
            in_specs=[
                pl.BlockSpec((tm, tk), lambda i, k: (i, k)),             # A tile
                pl.BlockSpec((tk, f_pad), lambda i, k: (k, 0)),          # x rows (K tile)
                pl.BlockSpec((tm, f_pad), lambda i, k: (i, 0)),          # x root rows
                pl.BlockSpec((2 * f_pad, h_pad), lambda i, k: (0, 0)),   # fused W1 (resident)
                pl.BlockSpec((1, h_pad), lambda i, k: (0, 0)),           # b1 (resident)
            ],
            out_specs=pl.BlockSpec((tm, h_pad), lambda i, k: (i, 0)),
            scratch_shapes=[pltpu.VMEM((tm, f_pad), jnp.float32)],
        ),
        compiler_params=pltpu.CompilerParams(
            dimension_semantics=("parallel", "arbitrary"),
            vmem_limit_bytes=vmem_limit),
    )(a_bf, x_bf, x_bf, w1_bf, b1_p)

    # --- kernel 2: fused layer-2 + pooled output (reduction over node tiles) --
    out_p = pl.pallas_call(
        sage_layer2_pool_kernel,
        out_shape=jax.ShapeDtypeStruct((g_pad, o_pad), jnp.float32),
        grid_spec=pltpu.PrefetchScalarGridSpec(
            num_scalar_prefetch=0,
            grid=(n_pad // tk,),
            in_specs=[
                pl.BlockSpec((g_pad, tk), lambda k: (0, k)),             # (P@A) columns
                pl.BlockSpec((g_pad, tk), lambda k: (0, k)),             # P columns
                pl.BlockSpec((tk, h_pad), lambda k: (k, 0)),             # h1 rows
                pl.BlockSpec((2 * h_pad, o_pad), lambda k: (0, 0)),      # fused W2 (resident)
                pl.BlockSpec((1, o_pad), lambda k: (0, 0)),              # b2 (resident)
            ],
            out_specs=pl.BlockSpec((g_pad, o_pad), lambda k: (0, 0)),
            scratch_shapes=[pltpu.VMEM((g_pad, 2 * h_pad), jnp.float32)],
        ),
        compiler_params=pltpu.CompilerParams(
            dimension_semantics=("arbitrary",),
            vmem_limit_bytes=vmem_limit),
    )(pa_bf, p_bf, h1, w2_bf, b2_p)

    return out_p[:num_graphs, :out_feats]


def init_params(key, in_feats, hidden, out_feats):
    """Deterministic synthetic SAGEConv parameters (y = x @ W + b convention)."""
    k1, k2, k3, k4, k5, k6 = jax.random.split(key, 6)
    scale1 = 1.0 / jnp.sqrt(jnp.float32(in_feats))
    scale2 = 1.0 / jnp.sqrt(jnp.float32(hidden))
    w1l = jax.random.normal(k1, (in_feats, hidden), jnp.float32) * scale1
    w1r = jax.random.normal(k2, (in_feats, hidden), jnp.float32) * scale1
    b1 = jax.random.normal(k3, (1, hidden), jnp.float32) * 0.1
    w2l = jax.random.normal(k4, (hidden, out_feats), jnp.float32) * scale2
    w2r = jax.random.normal(k5, (hidden, out_feats), jnp.float32) * scale2
    b2 = jax.random.normal(k6, (1, out_feats), jnp.float32) * 0.1
    return (w1l, w1r, b1, w2l, w2r, b2)


def graphsage_reference(x, edge_index, batch, num_graphs, params):
    """Pure-JAX f32 reference (unfused, un-pushed-down) for tolerance checking."""
    N = x.shape[0]
    w1l, w1r, b1, w2l, w2r, b2 = params
    adj = jnp.zeros((N, N), jnp.float32).at[edge_index[1], edge_index[0]].add(1.0)
    deg = jnp.maximum(adj.sum(axis=1, keepdims=True), 1.0)
    a = adj / deg
    h1 = jnp.maximum(a @ x @ w1l + x @ w1r + b1, 0.0)
    h2 = a @ h1 @ w2l + h1 @ w2r + b2
    onehot = (batch[None, :] == jnp.arange(num_graphs)[:, None]).astype(jnp.float32)
    counts = jnp.maximum(onehot.sum(axis=1, keepdims=True), 1.0)
    return (onehot / counts) @ h2


if __name__ == "__main__":
    key = jax.random.PRNGKey(0)
    k_x, k_e, k_p = jax.random.split(key, 3)

    # Small synthetic batched graph: 2 graphs, 64 nodes total, 4 input features.
    N, E, G = 64, 256, 2
    in_feats, hidden, out_feats = 4, 64, 256

    x = jax.random.normal(k_x, (N, in_feats), jnp.float32)
    edge_index = jax.random.randint(k_e, (2, E), 0, N, dtype=jnp.int32)
    batch = jnp.concatenate([jnp.zeros(N // 2, jnp.int32),
                             jnp.ones(N - N // 2, jnp.int32)])

    params = init_params(k_p, in_feats, hidden, out_feats)

    out = graphsage_forward(x, edge_index, batch, G, params)
    out = jax.block_until_ready(out)
    assert out.shape == (G, out_feats)

    # Tolerance check vs f32 reference (bf16 matmul inputs => small drift expected).
    ref = graphsage_reference(x, edge_index, batch, G, params)
    max_err = float(jnp.max(jnp.abs(out - ref)))
    assert max_err < 0.1, f"mismatch vs reference: max abs err {max_err}"

    print("KERNEL_OK")
</pallas_src>

<mosaic_0001>
module attributes {stable_mosaic.version = 11 : i64} {
  func.func @sage_layer1_kernel(%arg0: i32, %arg1: i32, %arg2: memref<256x256xbf16, #tpu.memory_space<vmem>>, %arg3: memref<256x128xbf16, #tpu.memory_space<vmem>>, %arg4: memref<256x128xbf16, #tpu.memory_space<vmem>>, %arg5: memref<256x128xbf16, #tpu.memory_space<vmem>>, %arg6: memref<1x128xf32, #tpu.memory_space<vmem>>, %arg7: memref<256x128xbf16, #tpu.memory_space<vmem>>, %arg8: memref<256x128xf32, #tpu.memory_space<vmem>>) attributes {dimension_semantics = [#tpu.dimension_semantics<parallel>, #tpu.dimension_semantics<arbitrary>], iteration_bounds = array<i64: 1, 1>, scalar_prefetch = 0 : i64, scratch_operands = 1 : i64, tpu.core_type = #tpu.core_type<tc>, window_params = [{transform_indices = @transform_0, window_bounds = array<i64: 256, 256>}, {transform_indices = @transform_1, window_bounds = array<i64: 256, 128>}, {transform_indices = @transform_2, window_bounds = array<i64: 256, 128>}, {pipeline_mode = #tpu.pipeline_mode<synchronous>, transform_indices = @transform_3, window_bounds = array<i64: 256, 128>}, {pipeline_mode = #tpu.pipeline_mode<synchronous>, transform_indices = @transform_4, window_bounds = array<i64: 1, 128>}, {transform_indices = @transform_5, window_bounds = array<i64: 256, 128>}]} {
    %c0_i32 = arith.constant 0 : i32
    %0 = arith.cmpi eq, %arg1, %c0_i32 : i32
    %1 = arith.extui %0 : i1 to i32
    %c0_i32_0 = arith.constant 0 : i32
    %2 = arith.cmpi ne, %1, %c0_i32_0 : i32
    scf.if %2 {
      %cst_10 = arith.constant 0.000000e+00 : f32
      %12 = vector.broadcast %cst_10 : f32 to vector<256x128xf32>
      %c0_11 = arith.constant 0 : index
      %c0_12 = arith.constant 0 : index
      %13 = vector.load %arg8[%c0_11, %c0_12] : memref<256x128xf32, #tpu.memory_space<vmem>>, vector<256x128xf32>
      tpu.vector_store %arg8[%c0_11, %c0_12], %12 {strides = array<i32>} : memref<256x128xf32, #tpu.memory_space<vmem>>, vector<256x128xf32>,
    } else {
    }
    %c0 = arith.constant 0 : index
    %c0_1 = arith.constant 0 : index
    %3 = vector.load %arg8[%c0, %c0_1] : memref<256x128xf32, #tpu.memory_space<vmem>>, vector<256x128xf32>
    %c0_2 = arith.constant 0 : index
    %c0_3 = arith.constant 0 : index
    %4 = vector.load %arg2[%c0_2, %c0_3] : memref<256x256xbf16, #tpu.memory_space<vmem>>, vector<256x256xbf16>
    %c0_4 = arith.constant 0 : index
    %c0_5 = arith.constant 0 : index
    %5 = vector.load %arg3[%c0_4, %c0_5] : memref<256x128xbf16, #tpu.memory_space<vmem>>, vector<256x128xbf16>
    %cst = arith.constant dense<0.000000e+00> : vector<256x128xf32>
    %6 = tpu.matmul %4, %5, %cst {dimension_numbers = #tpu.dot_dimension_numbers<[1], [0], [0], [1], [0, 0, 1, 1], [], []>} : vector<256x256xbf16>, vector<256x128xbf16>, vector<256x128xf32> -> vector<256x128xf32>
    %7 = arith.addf %3, %6 : vector<256x128xf32>
    %c0_6 = arith.constant 0 : index
    %c0_7 = arith.constant 0 : index
    %8 = vector.load %arg8[%c0_6, %c0_7] : memref<256x128xf32, #tpu.memory_space<vmem>>, vector<256x128xf32>
    tpu.vector_store %arg8[%c0_6, %c0_7], %7 {strides = array<i32>} : memref<256x128xf32, #tpu.memory_space<vmem>>, vector<256x128xf32>,
    %c0_i32_8 = arith.constant 0 : i32
    %9 = arith.cmpi eq, %arg1, %c0_i32_8 : i32
    %10 = arith.extui %9 : i1 to i32
    %c0_i32_9 = arith.constant 0 : i32
    %11 = arith.cmpi ne, %10, %c0_i32_9 : i32
    scf.if %11 {
      %c0_10 = arith.constant 0 : index
      %c0_11 = arith.constant 0 : index
      %12 = vector.load %arg8[%c0_10, %c0_11] : memref<256x128xf32, #tpu.memory_space<vmem>>, vector<256x128xf32>
      %13 = arith.truncf %12 : vector<256x128xf32> to vector<256x128xbf16>
      %c0_12 = arith.constant 0 : index
      %c0_13 = arith.constant 0 : index
      %14 = vector.load %arg4[%c0_12, %c0_13] : memref<256x128xbf16, #tpu.memory_space<vmem>>, vector<256x128xbf16>
      %15 = tpu.concatenate %13, %14 in 1 : vector<256x128xbf16>, vector<256x128xbf16> -> vector<256x256xbf16>
      %c0_14 = arith.constant 0 : index
      %c0_15 = arith.constant 0 : index
      %16 = vector.load %arg5[%c0_14, %c0_15] : memref<256x128xbf16, #tpu.memory_space<vmem>>, vector<256x128xbf16>
      %cst_16 = arith.constant dense<0.000000e+00> : vector<256x128xf32>
      %17 = tpu.matmul %15, %16, %cst_16 {dimension_numbers = #tpu.dot_dimension_numbers<[1], [0], [0], [1], [0, 0, 1, 1], [], []>} : vector<256x256xbf16>, vector<256x128xbf16>, vector<256x128xf32> -> vector<256x128xf32>
      %c0_17 = arith.constant 0 : index
      %c0_18 = arith.constant 0 : index
      %18 = vector.load %arg6[%c0_17, %c0_18] : memref<1x128xf32, #tpu.memory_space<vmem>>, vector<1x128xf32>
      %19 = vector.broadcast %18 : vector<1x128xf32> to vector<256x128xf32>
      %20 = arith.addf %17, %19 : vector<256x128xf32>
      %cst_19 = arith.constant 0.000000e+00 : f32
      %21 = vector.broadcast %cst_19 : f32 to vector<256x128xf32>
      %22 = arith.maximumf %20, %21 : vector<256x128xf32>
      %23 = arith.truncf %22 : vector<256x128xf32> to vector<256x128xbf16>
      %c0_20 = arith.constant 0 : index
      %c0_21 = arith.constant 0 : index
      %24 = vector.load %arg7[%c0_20, %c0_21] : memref<256x128xbf16, #tpu.memory_space<vmem>>, vector<256x128xbf16>
      tpu.vector_store %arg7[%c0_20, %c0_21], %23 {strides = array<i32>} : memref<256x128xbf16, #tpu.memory_space<vmem>>, vector<256x128xbf16>,
    } else {
    }
    return
  }
  func.func @transform_0(%arg0: i32, %arg1: i32) -> (i32, i32) {
    %c0_i32 = arith.constant 0 : i32
    return %arg0, %arg1 : i32, i32
  }
  func.func @transform_1(%arg0: i32, %arg1: i32) -> (i32, i32) {
    %c0_i32 = arith.constant 0 : i32
    %c0_i32_0 = arith.constant 0 : i32
    return %arg1, %c0_i32 : i32, i32
  }
  func.func @transform_2(%arg0: i32, %arg1: i32) -> (i32, i32) {
    %c0_i32 = arith.constant 0 : i32
    %c0_i32_0 = arith.constant 0 : i32
    return %arg0, %c0_i32 : i32, i32
  }
  func.func @transform_3(%arg0: i32, %arg1: i32) -> (i32, i32) {
    %c0_i32 = arith.constant 0 : i32
    %c0_i32_0 = arith.constant 0 : i32
    %c0_i32_1 = arith.constant 0 : i32
    return %c0_i32, %c0_i32_0 : i32, i32
  }
  func.func @transform_4(%arg0: i32, %arg1: i32) -> (i32, i32) {
    %c0_i32 = arith.constant 0 : i32
    %c0_i32_0 = arith.constant 0 : i32
    %c0_i32_1 = arith.constant 0 : i32
    return %c0_i32, %c0_i32_0 : i32, i32
  }
  func.func @transform_5(%arg0: i32, %arg1: i32) -> (i32, i32) {
    %c0_i32 = arith.constant 0 : i32
    %c0_i32_0 = arith.constant 0 : i32
    return %arg0, %c0_i32 : i32, i32
  }
}

</mosaic_0001>

<bundles_post_ra>
// kernel: tpu_custom_call.1
= control target key start
LH: loop header
LB: loop body
LE: loop exit
PB: predicated region body
PF: predicated region fallthrough
CT: control target
= control target key end

     0   :  { %10 = vsyncpa [#allocation4], 0  ;;  %s2195_s0 = inlined_call_operand.hbm [shape: bf16[256,256], index: 0, kind: input, shape index: {}]   ;;  %s2196_s1 = inlined_call_operand.hbm [shape: bf16[256,128], index: 1, kind: input, shape index: {}]   ;;  %s2197_s2 = inlined_call_operand.hbm [shape: bf16[256,128], index: 2, kind: input, shape index: {}]   ;;  %s2198_s3 = inlined_call_operand.hbm [shape: bf16[256,128], index: 3, kind: input, shape index: {}]   ;;  %s2199_s4 = inlined_call_operand.vmem [shape: f32[1,128], index: 4, kind: input, shape index: {}]   ;;  %s2200_s5 = inlined_call_operand.hbm [shape: bf16[256,128], index: 5, kind: output, shape index: {}]  }
   0x1   :  { %11 = vsyncpa [#allocation7], 0 }
   0x2   :  { %12 = vsyncpa [#allocation10], 0  ;;  %s31_s20 = sshll.u32 %s2196_s1, 4  ;;  %s32_s20 = int_to_ptr.hbm [resolvable:$true] %s31_s20 }
   0x3   :  { %13 = vsyncpa [#allocation5], 0  ;;  %s2065_s21 = smov [#allocation6]   ;;  %s18_s25 = sshll.u32 %s2195_s0, 4  ;;  %s19_s25 = int_to_ptr.hbm [resolvable:$true] %s18_s25 }
   0x4   :  { %s33_s22 = sshll.u32 %s2065_s21, 4  ;;  %s2066_s26 = smov 64   ;;  %s34_s22 = int_to_ptr.vmem [resolvable:$true] %s33_s22 }
   0x5   :  { %s2067_s27 = smov 4   ;;  %s2068_s28 = smov [#allocation3]  }
   0x6   :  { %39 = dma.hbm_to_vmem [thread:$0]  %s32_s20, 2048, %s34_s22, [#allocation7], %s2066_s26, %s2066_s26, %s2067_s27  }
   0x7   :  { %s20_s29 = sshll.u32 %s2068_s28, 4  ;;  %s2069_s1 = smov 128   ;;  %s21_s29 = int_to_ptr.vmem [resolvable:$true] %s20_s29 }
   0x8   :  { %s2070_s30 = smov 8   ;;  %s44_s8 = sshll.u32 %s2197_s2, 4  ;;  %s45_s8 = int_to_ptr.hbm [resolvable:$true] %s44_s8 }
   0x9   :  { %26 = dma.hbm_to_vmem [thread:$0]  %s19_s25, 4096, %s21_s29, [#allocation4], %s2069_s1, %s2069_s1, %s2070_s30  }
   0xa   :  { %s2071_s9 = smov [#allocation8]   ;;  %s57_s12 = sshll.u32 %s2198_s3, 4  ;;  %s58_s12 = int_to_ptr.hbm [resolvable:$true] %s57_s12 }
   0xb   :  { %s46_s0 = sshll.u32 %s2071_s9, 4  ;;  %s2072_s13 = smov [#allocation9]   ;;  %s47_s0 = int_to_ptr.vmem [resolvable:$true] %s46_s0 }
   0xc   :  { %52 = dma.hbm_to_vmem [thread:$0]  %s45_s8, 2048, %s47_s0, [#allocation7], %s2066_s26, %s2066_s26, %s2067_s27  }
   0xd   :  { %s59_s14 = sshll.u32 %s2072_s13, 4  ;;  %s60_s14 = int_to_ptr.vmem [resolvable:$true] %s59_s14 }
   0xe   :  { %65 = dma.hbm_to_vmem [thread:$0]  %s58_s12, 2048, %s60_s14, [#allocation10], %s2066_s26, %s2066_s26, %s2067_s27  }
   0xf   :  { %2057 = dma.done.wait [#allocation4], 4096  }
  0x10   :  { %2058 = vsyncadd [#allocation4], 4294963200 }
  0x11   :  { %2059 = dma.done.wait [#allocation7], 4096  }
  0x12   :  { %2060 = vsyncadd [#allocation7], 4294963200 }
  0x13   :  { %2061 = dma.done.wait [#allocation10], 2048  }
  0x14   :  { %2062 = vsyncadd [#allocation10], 4294965248  ;;  %v1791_v0 = vld [vmem:[#allocation6 + $0x38] sm:$0xff]  ;;  %v1790_v2 = vld [vmem:[#allocation6 + $0x30] sm:$0xff]  ;;  %s1417_s18 = sshll.u32 %s2200_s5, 4  ;;  %s1418_s18 = int_to_ptr.hbm [resolvable:$true] %s1417_s18 }
  0x15   :  { %v1799_v1 = vld [vmem:[#allocation6 + $0x78] sm:$0xff]  ;;  %472 = vmatpush.bf16.msra.mxu0 %v1791_v0  ;;  %v1798_v3 = vld [vmem:[#allocation6 + $0x70] sm:$0xff]  ;;  %v1789_v4 = vld [vmem:[#allocation6 + $0x28] sm:$0xff] }
  0x16   :  { %561 = vmatpush.bf16.msra.mxu1 %v1799_v1  ;;  %v1797_v5 = vld [vmem:[#allocation6 + $0x68] sm:$0xff]  ;;  %v1788_v6 = vld [vmem:[#allocation6 + $0x20] sm:$0xff]  ;;  %v1787_v8 = vld [vmem:[#allocation6 + $0x18] sm:$0xff] }
  0x17   :  { %v1796_v7 = vld [vmem:[#allocation6 + $0x60] sm:$0xff]  ;;  %v1795_v9 = vld [vmem:[#allocation6 + $0x58] sm:$0xff]  ;;  %v1786_v10 = vld [vmem:[#allocation6 + $0x10] sm:$0xff] }
  0x18   :  { %v1794_v11 = vld [vmem:[#allocation6 + $0x50] sm:$0xff]  ;;  %v1785_v12 = vld [vmem:[#allocation6 + $0x8] sm:$0xff]  ;;  %v1784_v14 = vld [vmem:[#allocation6] sm:$0xff] }
  0x19   :  { %473 = vmatpush.bf16.msra.mxu0 %v1790_v2  ;;  %v1793_v13 = vld [vmem:[#allocation6 + $0x48] sm:$0xff]  ;;  %v1792_v15 = vld [vmem:[#allocation6 + $0x40] sm:$0xff]  ;;  %v1442_v22 = vld [vmem:[#allocation3 + $0x10] sm:$0xf] }
  0x1a   :  { %562 = vmatpush.bf16.msra.mxu1 %v1798_v3  ;;  %v1434_v16 = vld [vmem:[#allocation3] sm:$0xf]  ;;  %v1753_v17 = vld [vmem:[#allocation3 + $0x4] sm:$0xf0]  ;;  %v1752_v18 = vld [vmem:[#allocation3 + $0x4] sm:$0xf] }
  0x1b   :  { %v1436_v19 = vld [vmem:[#allocation3 + $0x8] sm:$0xf0]  ;;  %v1435_v20 = vor.u32 %v1753_v17, %v1434_v16  ;;  %v1755_v23 = vld [vmem:[#allocation3 + $0x14] sm:$0xf0]  ;;  %v1754_v24 = vld [vmem:[#allocation3 + $0x14] sm:$0xf] }
  0x1c   :  { %v1439_v21 = vor.u32 %v1752_v18, %v1436_v19  ;;  %v1444_v25 = vld [vmem:[#allocation3 + $0x18] sm:$0xf0]  ;;  %v1443_v26 = vor.u32 %v1755_v23, %v1442_v22  ;;  %v1450_v28 = vld [vmem:[#allocation3 + $0x20] sm:$0xf]  ;;  %v1757_v29 = vld [vmem:[#allocation3 + $0x24] sm:$0xf0] }
  0x1d   :  { %474 = vmatpush.bf16.msra.mxu0 %v1789_v4  ;;  %v1447_v27 = vor.u32 %v1754_v24, %v1444_v25  ;;  %v1756_v30 = vld [vmem:[#allocation3 + $0x24] sm:$0xf]  ;;  %v1452_v31 = vld [vmem:[#allocation3 + $0x28] sm:$0xf0]  ;;  %v1451_v32 = vor.u32 %v1757_v29, %v1450_v28  ;;  %v1458_v34 = vld [vmem:[#allocation3 + $0x30] sm:$0xf] }
  0x1e   :  { %563 = vmatpush.bf16.msra.mxu1 %v1797_v5  ;;  %v1455_v33 = vor.u32 %v1756_v30, %v1452_v31  ;;  %v1759_v35 = vld [vmem:[#allocation3 + $0x34] sm:$0xf0]  ;;  %v1758_v36 = vld [vmem:[#allocation3 + $0x34] sm:$0xf]  ;;  %v1460_v37 = vld [vmem:[#allocation3 + $0x38] sm:$0xf0] }
  0x1f   :  { %v1459_v38 = vor.u32 %v1759_v35, %v1458_v34  ;;  %v1463_v39 = vor.u32 %v1758_v36, %v1460_v37  ;;  %v1466_v40 = vld [vmem:[#allocation3 + $0x40] sm:$0xf]  ;;  %v1761_v41 = vld [vmem:[#allocation3 + $0x44] sm:$0xf0]  ;;  %v1760_v42 = vld [vmem:[#allocation3 + $0x44] sm:$0xf] }
  0x20   :  { %v1468_v43 = vld [vmem:[#allocation3 + $0x48] sm:$0xf0]  ;;  %v1467_v44 = vor.u32 %v1761_v41, %v1466_v40  ;;  %v1831_v46 = vld [vmem:[#allocation9 + $0x78] sm:$0xff]  ;;  %v1830_v48 = vld [vmem:[#allocation9 + $0x70] sm:$0xff] }
  0x21   :  { %475 = vmatpush.bf16.msra.mxu0 %v1788_v6  ;;  %v1471_v45 = vor.u32 %v1760_v42, %v1468_v43  ;;  %v1823_v47 = vld [vmem:[#allocation9 + $0x38] sm:$0xff]  ;;  %1226 = vmatpush.bf16.msra.mxu3 %v1831_v46  ;;  %v1474_v49 = vld [vmem:[#allocation3 + $0x50] sm:$0xf]  ;;  %v1762_v51 = vld [vmem:[#allocation3 + $0x54] sm:$0xf] }
  0x22   :  { %564 = vmatpush.bf16.msra.mxu1 %v1796_v7  ;;  %1137 = vmatpush.bf16.msra.mxu2 %v1823_v47  ;;  %v1763_v50 = vld [vmem:[#allocation3 + $0x54] sm:$0xf0]  ;;  %v1476_v52 = vld [vmem:[#allocation3 + $0x58] sm:$0xf0]  ;;  %v1829_v55 = vld [vmem:[#allocation9 + $0x68] sm:$0xff] }
  0x23   :  { %v1475_v53 = vor.u32 %v1763_v50, %v1474_v49  ;;  %v1479_v54 = vor.u32 %v1762_v51, %v1476_v52  ;;  %v1822_v56 = vld [vmem:[#allocation9 + $0x30] sm:$0xff]  ;;  %v1828_v57 = vld [vmem:[#allocation9 + $0x60] sm:$0xff]  ;;  %v1821_v58 = vld [vmem:[#allocation9 + $0x28] sm:$0xff] }
  0x24   :  { %v1827_v59 = vld [vmem:[#allocation9 + $0x58] sm:$0xff]  ;;  %v1820_v60 = vld [vmem:[#allocation9 + $0x20] sm:$0xff]  ;;  %v1765_v62 = vld [vmem:[#allocation3 + $0x64] sm:$0xf0] }
  0x25   :  { %476 = vmatpush.bf16.msra.mxu0 %v1787_v8  ;;  %1227 = vmatpush.bf16.msra.mxu3 %v1830_v48  ;;  %v1482_v61 = vld [vmem:[#allocation3 + $0x60] sm:$0xf]  ;;  %v1764_v63 = vld [vmem:[#allocation3 + $0x64] sm:$0xf]  ;;  %v1484_v0 = vld [vmem:[#allocation3 + $0x68] sm:$0xf0] }
  0x26   :  { %565 = vmatpush.bf16.msra.mxu1 %v1795_v9  ;;  %1138 = vmatpush.bf16.msra.mxu2 %v1822_v56  ;;  %v1826_v1 = vld [vmem:[#allocation9 + $0x50] sm:$0xff]  ;;  %v1483_v2 = vor.u32 %v1765_v62, %v1482_v61  ;;  %v1487_v3 = vor.u32 %v1764_v63, %v1484_v0  ;;  %v1819_v4 = vld [vmem:[#allocation9 + $0x18] sm:$0xff]  ;;  %v1825_v5 = vld [vmem:[#allocation9 + $0x48] sm:$0xff] }
  0x27   :  { %v1818_v6 = vld [vmem:[#allocation9 + $0x10] sm:$0xff]  ;;  %v1824_v7 = vld [vmem:[#allocation9 + $0x40] sm:$0xff]  ;;  %v1817_v8 = vld [vmem:[#allocation9 + $0x8] sm:$0xff] }
  0x28   :  { %v1800_v9 = vld [vmem:[#allocation8] sm:$0xff]  ;;  %v1801_v17 = vld [vmem:[#allocation8 + $0x8] sm:$0xff]  ;;  %v1802_v31 = vld [vmem:[#allocation8 + $0x10] sm:$0xff] }
  0x29   :  { %477 = vmatpush.bf16.msra.mxu0 %v1786_v10  ;;  %1228 = vmatpush.bf16.msra.mxu3 %v1829_v55  ;;  %v1490_v10 = vld [vmem:[#allocation3 + $0x70] sm:$0xf]  ;;  %v1498_v18 = vld [vmem:[#allocation3 + $0x80] sm:$0xf]  ;;  %v1769_v19 = vld [vmem:[#allocation3 + $0x84] sm:$0xf0] }
  0x2a   :  { %566 = vmatpush.bf16.msra.mxu1 %v1794_v11  ;;  %1139 = vmatpush.bf16.msra.mxu2 %v1821_v58  ;;  %v1767_v11 = vld [vmem:[#allocation3 + $0x74] sm:$0xf0]  ;;  %v1499_v22 = vor.u32 %v1769_v19, %v1498_v18  ;;  %v1770_v35 = vld [vmem:[#allocation3 + $0x94] sm:$0xf]  ;;  %v1508_v36 = vld [vmem:[#allocation3 + $0x98] sm:$0xf0] }
  0x2b   :  { %v1771_v34 = vld [vmem:[#allocation3 + $0x94] sm:$0xf0]  ;;  %v1511_v41 = vor.u32 %v1770_v35, %v1508_v36  ;;  %v1514_v51 = vld [vmem:[#allocation3 + $0xa0] sm:$0xf]  ;;  %v1773_v52 = vld [vmem:[#allocation3 + $0xa4] sm:$0xf0] }
  0x2c   :  { %v1803_v49 = vld [vmem:[#allocation8 + $0x18] sm:$0xff]  ;;  %v1515_v58 = vor.u32 %v1773_v52, %v1514_v51 }
  0x2d   :  { %478 = vmatpush.bf16.msra.mxu0 %v1785_v12  ;;  %1229 = vmatpush.bf16.msra.mxu3 %v1828_v57  ;;  %v1766_v12 = vld [vmem:[#allocation3 + $0x74] sm:$0xf] }
  0x2e   :  { %567 = vmatpush.bf16.msra.mxu1 %v1793_v13  ;;  %1140 = vmatpush.bf16.msra.mxu2 %v1820_v60  ;;  %v1492_v13 = vld [vmem:[#allocation3 + $0x78] sm:$0xf0] }
  0x2f   :  { %v1495_v16 = vor.u32 %v1766_v12, %v1492_v13 }
  0x31   :  { %479 = vmatpush.bf16.msra.mxu0 %v1784_v14  ;;  %1230 = vmatpush.bf16.msra.mxu3 %v1827_v59  ;;  %v1816_v14 = vld [vmem:[#allocation9] sm:$0xff] }
  0x32   :  { %568 = vmatpush.bf16.msra.mxu1 %v1792_v15  ;;  %1141 = vmatpush.bf16.msra.mxu2 %v1819_v4  ;;  %v1491_v15 = vor.u32 %v1767_v11, %v1490_v10 }
  0x34   :  { %480 = vmatmul.bf16.vlgmr.msra.gmra.mxu0 %v1435_v20  ;;  %v1768_v20 = vld [vmem:[#allocation3 + $0x84] sm:$0xf] }
  0x35   :  { %569 = vmatmul.bf16.vlgmr.msra.gmra.mxu1 %v1439_v21  ;;  %1231 = vmatpush.bf16.msra.mxu3 %v1826_v1  ;;  %v1500_v21 = vld [vmem:[#allocation3 + $0x88] sm:$0xf0] }
  0x36   :  { %1142 = vmatpush.bf16.msra.mxu2 %v1818_v6  ;;  %v1503_v23 = vor.u32 %v1768_v20, %v1500_v21  ;;  %v1775_v6 = vld [vmem:[#allocation3 + $0xb4] sm:$0xf0]  ;;  %v1805_v21 = vld [vmem:[#allocation8 + $0x28] sm:$0xff] }
  0x39   :  { %1232 = vmatpush.bf16.msra.mxu3 %v1825_v5  ;;  %v1522_v5 = vld [vmem:[#allocation3 + $0xb0] sm:$0xf] }
  0x3a   :  { %1143 = vmatpush.bf16.msra.mxu2 %v1817_v8  ;;  %v1524_v8 = vld [vmem:[#allocation3 + $0xb8] sm:$0xf0]  ;;  %v1523_v12 = vor.u32 %v1775_v6, %v1522_v5 }
  0x3d   :  { %1233 = vmatpush.bf16.msra.mxu3 %v1824_v7  ;;  %v1774_v7 = vld [vmem:[#allocation3 + $0xb4] sm:$0xf] }
  0x3e   :  { %1144 = vmatpush.bf16.msra.mxu2 %v1816_v14  ;;  %v1527_v13 = vor.u32 %v1774_v7, %v1524_v8 }
  0x40   :  { %1234 = vmatmul.bf16.vlgmr.msra.gmra.mxu3 %v1800_v9 }
  0x44   :  { %485 = vmatmul.bf16.gmra.mxu0 %v1443_v26 }
  0x45   :  { %574 = vmatmul.bf16.gmra.mxu1 %v1447_v27 }
  0x50   :  { %1239 = vmatmul.bf16.gmra.mxu3 %v1801_v17 }
  0x54   :  { %490 = vmatmul.bf16.gmra.mxu0 %v1451_v32 }
  0x55   :  { %579 = vmatmul.bf16.gmra.mxu1 %v1455_v33  ;;  %v1506_v33 = vld [vmem:[#allocation3 + $0x90] sm:$0xf] }
  0x56   :  { %v1507_v40 = vor.u32 %v1771_v34, %v1506_v33 }
  0x60   :  { %1244 = vmatmul.bf16.gmra.mxu3 %v1802_v31 }
  0x64   :  { %495 = vmatmul.bf16.gmra.mxu0 %v1459_v38 }
  0x65   :  { %584 = vmatmul.bf16.gmra.mxu1 %v1463_v39 }
  0x70   :  { %1249 = vmatmul.bf16.gmra.mxu3 %v1803_v49 }
  0x74   :  { %500 = vmatmul.bf16.gmra.mxu0 %v1467_v44 }
  0x75   :  { %589 = vmatmul.bf16.gmra.mxu1 %v1471_v45 }
  0x84   :  { %505 = vmatmul.bf16.gmra.mxu0 %v1475_v53  ;;  %v1772_v53 = vld [vmem:[#allocation3 + $0xa4] sm:$0xf] }
  0x85   :  { %594 = vmatmul.bf16.gmra.mxu1 %v1479_v54  ;;  %v1516_v54 = vld [vmem:[#allocation3 + $0xa8] sm:$0xf0] }
  0x86   :  { %v1519_v59 = vor.u32 %v1772_v53, %v1516_v54 }
  0x94   :  { %510 = vmatmul.bf16.gmra.mxu0 %v1483_v2 }
  0x95   :  { %599 = vmatmul.bf16.gmra.mxu1 %v1487_v3  ;;  %v1804_v3 = vld [vmem:[#allocation8 + $0x20] sm:$0xff] }
  0x96   :  { %1254 = vmatmul.bf16.gmra.mxu3 %v1804_v3 }
  0xa4   :  { %515 = vmatmul.bf16.gmra.mxu0 %v1491_v15 }
  0xa5   :  { %604 = vmatmul.bf16.gmra.mxu1 %v1495_v16 }
  0xa6   :  { %1259 = vmatmul.bf16.gmra.mxu3 %v1805_v21 }
  0xb1   :  { %v481_v24 = vpop.f32.mrf.mxu0 }
  0xb2   :  { %v570_v25 = vpop.f32.mrf.mxu1 }
  0xb3   :  { %v571_v26 = vadd.f32 %v570_v25, %v481_v24  ;;  %v1777_v24 = vld [vmem:[#allocation3 + $0xc4] sm:$0xf0]  ;;  %v1776_v25 = vld [vmem:[#allocation3 + $0xc4] sm:$0xf] }
  0xb4   :  { %520 = vmatmul.bf16.gmra.mxu0 %v1499_v22 }
  0xb5   :  { %609 = vmatmul.bf16.gmra.mxu1 %v1503_v23  ;;  %v749_v29 = vpack.c.bf16 %v571_v26, %v571_v26  ;;  %v1530_v23 = vld [vmem:[#allocation3 + $0xc0] sm:$0xf]  ;;  %v1532_v26 = vld [vmem:[#allocation3 + $0xc8] sm:$0xf0] }
  0xb6   :  { %v1535_v31 = vor.u32 %v1776_v25, %v1532_v26 }
  0xb7   :  { %v845_v37 = vunpack.c.l.b16 %v749_v29 }
  0xb9   :  { %v483_v27 = vpop.f32.mrf.mxu0 }
  0xba   :  { %v572_v28 = vpop.f32.mrf.mxu1 }
  0xbb   :  { %v573_v30 = vadd.f32 %v572_v28, %v483_v27 }
  0xbd   :  { %v750_v32 = vpack.c.bf16 %v573_v30, %v573_v30  ;;  %v1531_v30 = vor.u32 %v1777_v24, %v1530_v23 }
  0xbf   :  { %v846_v38 = vunpack.c.l.b16 %v750_v32 }
  0xc1   :  { %v877_v39 = vpack.c.b16 %v846_v38, %v845_v37  ;;  %v486_v42 = vpop.f32.mrf.mxu0 }
  0xc2   :  { %v575_v43 = vpop.f32.mrf.mxu1 }
  0xc3   :  { %1145 = vmatmul.bf16.vlgmr.msra.gmra.mxu2 %v877_v39  ;;  %v576_v44 = vadd.f32 %v575_v43, %v486_v42  ;;  %v1806_v39 = vld [vmem:[#allocation8 + $0x30] sm:$0xff]  ;;  %v1779_v42 = vld [vmem:[#allocation3 + $0xd4] sm:$0xf0] }
  0xc4   :  { %525 = vmatmul.bf16.gmra.mxu0 %v1507_v40  ;;  %1264 = vmatmul.bf16.gmra.mxu3 %v1806_v39  ;;  %v1778_v43 = vld [vmem:[#allocation3 + $0xd4] sm:$0xf] }
  0xc5   :  { %614 = vmatmul.bf16.gmra.mxu1 %v1511_v41  ;;  %v751_v47 = vpack.c.bf16 %v576_v44, %v576_v44  ;;  %v1538_v41 = vld [vmem:[#allocation3 + $0xd0] sm:$0xf]  ;;  %v1540_v44 = vld [vmem:[#allocation3 + $0xd8] sm:$0xf0] }
  0xc6   :  { %v1543_v49 = vor.u32 %v1778_v43, %v1540_v44 }
  0xc7   :  { %v847_v55 = vunpack.c.l.b16 %v751_v47 }
  0xc9   :  { %v488_v45 = vpop.f32.mrf.mxu0 }
  0xca   :  { %v577_v46 = vpop.f32.mrf.mxu1 }
  0xcb   :  { %v578_v48 = vadd.f32 %v577_v46, %v488_v45 }
  0xcd   :  { %v752_v50 = vpack.c.bf16 %v578_v48, %v578_v48  ;;  %v1539_v48 = vor.u32 %v1779_v42, %v1538_v41 }
  0xcf   :  { %v848_v56 = vunpack.c.l.b16 %v752_v50 }
  0xd1   :  { %v878_v57 = vpack.c.b16 %v848_v56, %v847_v55  ;;  %v491_v60 = vpop.f32.mrf.mxu0 }
  0xd2   :  { %v580_v61 = vpop.f32.mrf.mxu1 }
  0xd3   :  { %1150 = vmatmul.bf16.gmra.mxu2 %v878_v57  ;;  %v581_v62 = vadd.f32 %v580_v61, %v491_v60  ;;  %v1807_v57 = vld [vmem:[#allocation8 + $0x38] sm:$0xff]  ;;  %v1781_v60 = vld [vmem:[#allocation3 + $0xe4] sm:$0xf0]  ;;  %v1780_v61 = vld [vmem:[#allocation3 + $0xe4] sm:$0xf] }
  0xd4   :  { %530 = vmatmul.bf16.gmra.mxu0 %v1515_v58  ;;  %1269 = vmatmul.bf16.gmra.mxu3 %v1807_v57 }
  0xd5   :  { %619 = vmatmul.bf16.gmra.mxu1 %v1519_v59  ;;  %v753_v1 = vpack.c.bf16 %v581_v62, %v581_v62  ;;  %v1546_v59 = vld [vmem:[#allocation3 + $0xe0] sm:$0xf]  ;;  %v1548_v62 = vld [vmem:[#allocation3 + $0xe8] sm:$0xf0] }
  0xd6   :  { %v1551_v3 = vor.u32 %v1780_v61, %v1548_v62  ;;  %v1811_v62 = vld [vmem:[#allocation8 + $0x58] sm:$0xff] }
  0xd7   :  { %v849_v9 = vunpack.c.l.b16 %v753_v1 }
  0xd9   :  { %v493_v63 = vpop.f32.mrf.mxu0 }
  0xda   :  { %v582_v0 = vpop.f32.mrf.mxu1 }
  0xdb   :  { %v583_v2 = vadd.f32 %v582_v0, %v493_v63 }
  0xdd   :  { %v754_v4 = vpack.c.bf16 %v583_v2, %v583_v2  ;;  %v1547_v2 = vor.u32 %v1781_v60, %v1546_v59 }
  0xdf   :  { %v850_v10 = vunpack.c.l.b16 %v754_v4 }
  0xe1   :  { %v879_v11 = vpack.c.b16 %v850_v10, %v849_v9  ;;  %v496_v14 = vpop.f32.mrf.mxu0 }
  0xe2   :  { %v585_v15 = vpop.f32.mrf.mxu1 }
  0xe3   :  { %1155 = vmatmul.bf16.gmra.mxu2 %v879_v11  ;;  %v586_v16 = vadd.f32 %v585_v15, %v496_v14  ;;  %v1808_v11 = vld [vmem:[#allocation8 + $0x40] sm:$0xff]  ;;  %v1783_v14 = vld [vmem:[#allocation3 + $0xf4] sm:$0xf0]  ;;  %v1782_v15 = vld [vmem:[#allocation3 + $0xf4] sm:$0xf] }
  0xe4   :  { %535 = vmatmul.bf16.gmra.mxu0 %v1523_v12  ;;  %1274 = vmatmul.bf16.gmra.mxu3 %v1808_v11 }
  0xe5   :  { %624 = vmatmul.bf16.gmra.mxu1 %v1527_v13  ;;  %v755_v19 = vpack.c.bf16 %v586_v16, %v586_v16  ;;  %v1554_v13 = vld [vmem:[#allocation3 + $0xf0] sm:$0xf]  ;;  %v1556_v16 = vld [vmem:[#allocation3 + $0xf8] sm:$0xf0] }
  0xe6   :  { %v1555_v21 = vor.u32 %v1783_v14, %v1554_v13 }
  0xe7   :  { %v851_v27 = vunpack.c.l.b16 %v755_v19  ;;  %v1235_v19 = vpop.f32.mrf.mxu3 }
  0xe9   :  { %v498_v17 = vpop.f32.mrf.mxu0 }
  0xea   :  { %v587_v18 = vpop.f32.mrf.mxu1 }
  0xeb   :  { %v588_v20 = vadd.f32 %v587_v18, %v498_v17 }
  0xed   :  { %v756_v22 = vpack.c.bf16 %v588_v20, %v588_v20 }
  0xef   :  { %v852_v28 = vunpack.c.l.b16 %v756_v22  ;;  %v1559_v22 = vor.u32 %v1782_v15, %v1556_v16  ;;  %v1237_v26 = vpop.f32.mrf.mxu3 }
  0xf1   :  { %v880_v29 = vpack.c.b16 %v852_v28, %v851_v27  ;;  %v501_v32 = vpop.f32.mrf.mxu0 }
  0xf2   :  { %v590_v33 = vpop.f32.mrf.mxu1 }
  0xf3   :  { %1160 = vmatmul.bf16.gmra.mxu2 %v880_v29  ;;  %v591_v34 = vadd.f32 %v590_v33, %v501_v32 }
  0xf4   :  { %540 = vmatmul.bf16.gmra.mxu0 %v1531_v30 }
  0xf5   :  { %629 = vmatmul.bf16.gmra.mxu1 %v1535_v31  ;;  %v757_v37 = vpack.c.bf16 %v591_v34, %v591_v34  ;;  %v1809_v31 = vld [vmem:[#allocation8 + $0x48] sm:$0xff] }
  0xf6   :  { %1279 = vmatmul.bf16.gmra.mxu3 %v1809_v31 }
  0xf7   :  { %v853_v45 = vunpack.c.l.b16 %v757_v37 }
  0xf9   :  { %v503_v35 = vpop.f32.mrf.mxu0 }
  0xfa   :  { %v592_v36 = vpop.f32.mrf.mxu1 }
  0xfb   :  { %v593_v38 = vadd.f32 %v592_v36, %v503_v35  ;;  %v1240_v35 = vpop.f32.mrf.mxu3 }
  0xfd   :  { %v758_v40 = vpack.c.bf16 %v593_v38, %v593_v38 }
  0xff   :  { %v854_v46 = vunpack.c.l.b16 %v758_v40 }
 0x101   :  { %v881_v47 = vpack.c.b16 %v854_v46, %v853_v45  ;;  %v506_v50 = vpop.f32.mrf.mxu0  ;;  %v1810_v45 = vld [vmem:[#allocation8 + $0x50] sm:$0xff] }
 0x102   :  { %v595_v51 = vpop.f32.mrf.mxu1 }
 0x103   :  { %1165 = vmatmul.bf16.gmra.mxu2 %v881_v47  ;;  %v596_v52 = vadd.f32 %v595_v51, %v506_v50  ;;  %v1242_v40 = vpop.f32.mrf.mxu3 }
 0x104   :  { %545 = vmatmul.bf16.gmra.mxu0 %v1539_v48 }
 0x105   :  { %634 = vmatmul.bf16.gmra.mxu1 %v1543_v49  ;;  %v759_v55 = vpack.c.bf16 %v596_v52, %v596_v52 }
 0x106   :  { %1284 = vmatmul.bf16.gmra.mxu3 %v1810_v45  ;;  %v1813_v45 = vld [vmem:[#allocation8 + $0x68] sm:$0xff] }
 0x107   :  { %v855_v63 = vunpack.c.l.b16 %v759_v55  ;;  %v2130_v55 = vld [vmem:[%s2199_s4] ss:$0 sm:$0xff]  ;;  %s2073_s4 = smov [#allocation11]  }
 0x108   :  { %s1415_s15 = sshll.u32 %s2073_s4, 4  ;;  %s1416_s15 = int_to_ptr.vmem [resolvable:$true] %s1415_s15 }
 0x109   :  { %v508_v53 = vpop.f32.mrf.mxu0 }
 0x10a   :  { %v597_v54 = vpop.f32.mrf.mxu1 }
 0x10b   :  { %v598_v56 = vadd.f32 %v597_v54, %v508_v53  ;;  %v2125_v49 = vpop.f32.mrf.mxu3 }
 0x10d   :  { %v760_v58 = vpack.c.bf16 %v598_v56, %v598_v56 }
 0x10f   :  { %v856_v0 = vunpack.c.l.b16 %v760_v58 }
 0x111   :  { %v882_v1 = vpack.c.b16 %v856_v0, %v855_v63  ;;  %v511_v4 = vpop.f32.mrf.mxu0 }
 0x112   :  { %v600_v5 = vpop.f32.mrf.mxu1 }
 0x113   :  { %1170 = vmatmul.bf16.gmra.mxu2 %v882_v1  ;;  %v601_v6 = vadd.f32 %v600_v5, %v511_v4  ;;  %v2132_v56 = vpop.f32.mrf.mxu3 }
 0x114   :  { %550 = vmatmul.bf16.gmra.mxu0 %v1547_v2 }
 0x115   :  { %639 = vmatmul.bf16.gmra.mxu1 %v1551_v3  ;;  %v761_v9 = vpack.c.bf16 %v601_v6, %v601_v6 }
 0x116   :  { %1289 = vmatmul.bf16.gmra.mxu3 %v1811_v62 }
 0x117   :  { %v857_v17 = vunpack.c.l.b16 %v761_v9 }
 0x119   :  { %v513_v7 = vpop.f32.mrf.mxu0 }
 0x11a   :  { %v602_v8 = vpop.f32.mrf.mxu1 }
 0x11b   :  { %v603_v10 = vadd.f32 %v602_v8, %v513_v7  ;;  %v2136_v5 = vpop.f32.mrf.mxu3 }
 0x11d   :  { %v762_v12 = vpack.c.bf16 %v603_v10, %v603_v10 }
 0x11f   :  { %v858_v18 = vunpack.c.l.b16 %v762_v12 }
 0x121   :  { %v883_v20 = vpack.c.b16 %v858_v18, %v857_v17  ;;  %v516_v23 = vpop.f32.mrf.mxu0 }
 0x122   :  { %v605_v24 = vpop.f32.mrf.mxu1 }
 0x123   :  { %1175 = vmatmul.bf16.gmra.mxu2 %v883_v20  ;;  %v606_v25 = vadd.f32 %v605_v24, %v516_v23  ;;  %v2138_v15 = vpop.f32.mrf.mxu3 }
 0x124   :  { %555 = vmatmul.bf16.gmra.mxu0 %v1555_v21  ;;  %v1812_v21 = vld [vmem:[#allocation8 + $0x60] sm:$0xff] }
 0x125   :  { %644 = vmatmul.bf16.gmra.mxu1 %v1559_v22  ;;  %v763_v29 = vpack.c.bf16 %v606_v25, %v606_v25 }
 0x126   :  { %1294 = vmatmul.bf16.gmra.mxu3 %v1812_v21 }
 0x127   :  { %v859_v33 = vunpack.c.l.b16 %v763_v29 }
 0x129   :  { %v518_v27 = vpop.f32.mrf.mxu0 }
 0x12a   :  { %v607_v28 = vpop.f32.mrf.mxu1 }
 0x12b   :  { %v608_v30 = vadd.f32 %v607_v28, %v518_v27  ;;  %v2142_v28 = vpop.f32.mrf.mxu3 }
 0x12d   :  { %v764_v32 = vpack.c.bf16 %v608_v30, %v608_v30 }
 0x12f   :  { %v860_v34 = vunpack.c.l.b16 %v764_v32 }
 0x131   :  { %v884_v36 = vpack.c.b16 %v860_v34, %v859_v33  ;;  %v521_v37 = vpop.f32.mrf.mxu0 }
 0x132   :  { %v610_v38 = vpop.f32.mrf.mxu1 }
 0x133   :  { %1180 = vmatmul.bf16.gmra.mxu2 %v884_v36  ;;  %v611_v39 = vadd.f32 %v610_v38, %v521_v37 }
 0x135   :  { %v765_v43 = vpack.c.bf16 %v611_v39, %v611_v39  ;;  %v2144_v39 = vpop.f32.mrf.mxu3 }
 0x136   :  { %1299 = vmatmul.bf16.gmra.mxu3 %v1813_v45 }
 0x137   :  { %v861_v47 = vunpack.c.l.b16 %v765_v43 }
 0x139   :  { %v523_v41 = vpop.f32.mrf.mxu0 }
 0x13a   :  { %v612_v42 = vpop.f32.mrf.mxu1 }
 0x13b   :  { %v613_v44 = vadd.f32 %v612_v42, %v523_v41 }
 0x13d   :  { %v766_v46 = vpack.c.bf16 %v613_v44, %v613_v44 }
 0x13f   :  { %v862_v48 = vunpack.c.l.b16 %v766_v46 }
 0x141   :  { %v885_v50 = vpack.c.b16 %v862_v48, %v861_v47  ;;  %v526_v51 = vpop.f32.mrf.mxu0 }
 0x142   :  { %v615_v52 = vpop.f32.mrf.mxu1 }
 0x143   :  { %1185 = vmatmul.bf16.gmra.mxu2 %v885_v50  ;;  %v616_v54 = vadd.f32 %v615_v52, %v526_v51  ;;  %v2149_v52 = vpop.f32.mrf.mxu3 }
 0x145   :  { %v767_v59 = vpack.c.bf16 %v616_v54, %v616_v54 }
 0x146   :  { %v1146_v53 = vpop.f32.mrf.mxu2 }
 0x147   :  { %v1147_v60 = vadd.f32 %v2130_v55, %v1146_v53  ;;  %v863_v1 = vunpack.c.l.b16 %v767_v59 }
 0x149   :  { %v528_v57 = vpop.f32.mrf.mxu0  ;;  %v1236_v2 = vadd.f32 %v1235_v19, %v1147_v60 }
 0x14a   :  { %v617_v58 = vpop.f32.mrf.mxu1 }
 0x14b   :  { %v618_v61 = vadd.f32 %v617_v58, %v528_v57  ;;  %v1315_v10 = vmax.f32 %v1236_v2, 0.0 }
 0x14d   :  { %v768_v63 = vpack.c.bf16 %v618_v61, %v618_v61 }
 0x14e   :  { %v1148_v0 = vpop.f32.mrf.mxu2 }
 0x14f   :  { %v864_v3 = vunpack.c.l.b16 %v768_v63  ;;  %v1149_v4 = vadd.f32 %v2130_v55, %v1148_v0  ;;  %v2152_v0 = vpop.f32.mrf.mxu3 }
 0x151   :  { %v1238_v6 = vadd.f32 %v1237_v26, %v1149_v4  ;;  %v886_v7 = vpack.c.b16 %v864_v3, %v863_v1  ;;  %v531_v8 = vpop.f32.mrf.mxu0 }
 0x152   :  { %v620_v9 = vpop.f32.mrf.mxu1 }
 0x153   :  { %v1316_v11 = vmax.f32 %v1238_v6, 0.0  ;;  %1190 = vmatmul.bf16.gmra.mxu2 %v886_v7  ;;  %v621_v14 = vadd.f32 %v620_v9, %v531_v8  ;;  %v1814_v6 = vld [vmem:[#allocation8 + $0x70] sm:$0xff] }
 0x154   :  { %1304 = vmatmul.bf16.gmra.mxu3 %v1814_v6 }
 0x155   :  { %v1835_v12 = vpack.c.bf16 %v1316_v11, %v1315_v10  ;;  %v769_v18 = vpack.c.bf16 %v621_v14, %v621_v14 }
 0x156   :  { %v1151_v13 = vpop.f32.mrf.mxu2 }
 0x157   :  { %1836 = vst [vmem:[#allocation11] sm:$0xff] %v1835_v12   ;;  %v1152_v19 = vadd.f32 %v2130_v55, %v1151_v13  ;;  %v865_v24 = vunpack.c.l.b16 %v769_v18  ;;  %v2158_v14 = vpop.f32.mrf.mxu3 }
 0x159   :  { %v533_v16 = vpop.f32.mrf.mxu0  ;;  %v1241_v25 = vadd.f32 %v1240_v35, %v1152_v19 }
 0x15a   :  { %v622_v17 = vpop.f32.mrf.mxu1 }
 0x15b   :  { %v623_v20 = vadd.f32 %v622_v17, %v533_v16  ;;  %v1317_v33 = vmax.f32 %v1241_v25, 0.0 }
 0x15d   :  { %v770_v22 = vpack.c.bf16 %v623_v20, %v623_v20 }
 0x15e   :  { %v1153_v23 = vpop.f32.mrf.mxu2 }
 0x15f   :  { %v866_v26 = vunpack.c.l.b16 %v770_v22  ;;  %v1154_v27 = vadd.f32 %v2130_v55, %v1153_v23 }
 0x161   :  { %v1243_v29 = vadd.f32 %v1242_v40, %v1154_v27  ;;  %v887_v30 = vpack.c.b16 %v866_v26, %v865_v24  ;;  %v536_v31 = vpop.f32.mrf.mxu0  ;;  %v1267_v27 = vpop.f32.mrf.mxu3 }
 0x162   :  { %v625_v32 = vpop.f32.mrf.mxu1 }
 0x163   :  { %v1318_v34 = vmax.f32 %v1243_v29, 0.0  ;;  %1195 = vmatmul.bf16.gmra.mxu2 %v887_v30  ;;  %v626_v38 = vadd.f32 %v625_v32, %v536_v31  ;;  %v1815_v29 = vld [vmem:[#allocation8 + $0x78] sm:$0xff] }
 0x164   :  { %1309 = vmatmul.bf16.gmra.mxu3 %v1815_v29 }
 0x165   :  { %v1840_v36 = vpack.c.bf16 %v1318_v34, %v1317_v33  ;;  %v771_v42 = vpack.c.bf16 %v626_v38, %v626_v38 }
 0x166   :  { %v1156_v37 = vpop.f32.mrf.mxu2 }
 0x167   :  { %1912 = vst [vmem:[#allocation11 + $0x8] sm:$0xff] %v1840_v36   ;;  %v1157_v43 = vadd.f32 %v2130_v55, %v1156_v37  ;;  %v867_v47 = vunpack.c.l.b16 %v771_v42 }
 0x169   :  { %v538_v41 = vpop.f32.mrf.mxu0  ;;  %v1246_v48 = vadd.f32 %v2125_v49, %v1157_v43 }
 0x16a   :  { %v627_v35 = vpop.f32.mrf.mxu1 }
 0x16b   :  { %v628_v44 = vadd.f32 %v627_v35, %v538_v41  ;;  %v1319_v59 = vmax.f32 %v1246_v48, 0.0 }
 0x16d   :  { %v772_v40 = vpack.c.bf16 %v628_v44, %v628_v44  ;;  %v1270_v44 = vpop.f32.mrf.mxu3 }
 0x16e   :  { %v1158_v46 = vpop.f32.mrf.mxu2 }
 0x16f   :  { %v868_v50 = vunpack.c.l.b16 %v772_v40  ;;  %v1159_v51 = vadd.f32 %v2130_v55, %v1158_v46 }
 0x171   :  { %v1248_v53 = vadd.f32 %v2132_v56, %v1159_v51  ;;  %v888_v54 = vpack.c.b16 %v868_v50, %v867_v47  ;;  %v541_v57 = vpop.f32.mrf.mxu0 }
 0x172   :  { %v630_v58 = vpop.f32.mrf.mxu1 }
 0x173   :  { %v1320_v60 = vmax.f32 %v1248_v53, 0.0  ;;  %1200 = vmatmul.bf16.gmra.mxu2 %v888_v54  ;;  %v631_v63 = vadd.f32 %v630_v58, %v541_v57 }
 0x175   :  { %v1845_v61 = vpack.c.bf16 %v1320_v60, %v1319_v59  ;;  %v773_v2 = vpack.c.bf16 %v631_v63, %v631_v63  ;;  %v1272_v59 = vpop.f32.mrf.mxu3 }
 0x176   :  { %v1161_v62 = vpop.f32.mrf.mxu2 }
 0x177   :  { %1913 = vst [vmem:[#allocation11 + $0x10] sm:$0xff] %v1845_v61   ;;  %v1162_v3 = vadd.f32 %v2130_v55, %v1161_v62  ;;  %v869_v8 = vunpack.c.l.b16 %v773_v2 }
 0x179   :  { %v543_v49 = vpop.f32.mrf.mxu0  ;;  %v1251_v9 = vadd.f32 %v2136_v5, %v1162_v3 }
 0x17a   :  { %v632_v1 = vpop.f32.mrf.mxu1 }
 0x17b   :  { %v633_v4 = vadd.f32 %v632_v1, %v543_v49  ;;  %v1321_v18 = vmax.f32 %v1251_v9, 0.0 }
 0x17d   :  { %v774_v56 = vpack.c.bf16 %v633_v4, %v633_v4  ;;  %v1275_v6 = vpop.f32.mrf.mxu3 }
 0x17e   :  { %v1163_v7 = vpop.f32.mrf.mxu2 }
 0x17f   :  { %v870_v10 = vunpack.c.l.b16 %v774_v56  ;;  %v1164_v11 = vadd.f32 %v2130_v55, %v1163_v7 }
 0x181   :  { %v889_v12 = vpack.c.b16 %v870_v10, %v869_v8  ;;  %v1253_v13 = vadd.f32 %v2138_v15, %v1164_v11  ;;  %v546_v16 = vpop.f32.mrf.mxu0 }
 0x182   :  { %v635_v17 = vpop.f32.mrf.mxu1 }
 0x183   :  { %v1322_v19 = vmax.f32 %v1253_v13, 0.0  ;;  %1205 = vmatmul.bf16.gmra.mxu2 %v889_v12  ;;  %v636_v22 = vadd.f32 %v635_v17, %v546_v16 }
 0x185   :  { %v1850_v20 = vpack.c.bf16 %v1322_v19, %v1321_v18  ;;  %v775_v5 = vpack.c.bf16 %v636_v22, %v636_v22 }
 0x186   :  { %v1166_v21 = vpop.f32.mrf.mxu2 }
 0x187   :  { %1914 = vst [vmem:[#allocation11 + $0x18] sm:$0xff] %v1850_v20   ;;  %v1167_v25 = vadd.f32 %v2130_v55, %v1166_v21  ;;  %v871_v31 = vunpack.c.l.b16 %v775_v5  ;;  %v1277_v21 = vpop.f32.mrf.mxu3 }
 0x189   :  { %v548_v23 = vpop.f32.mrf.mxu0  ;;  %v1256_v32 = vadd.f32 %v2142_v28, %v1167_v25 }
 0x18a   :  { %v637_v24 = vpop.f32.mrf.mxu1 }
 0x18b   :  { %v638_v26 = vadd.f32 %v637_v24, %v548_v23  ;;  %v1323_v35 = vmax.f32 %v1256_v32, 0.0 }
 0x18d   :  { %v776_v15 = vpack.c.bf16 %v638_v26, %v638_v26 }
 0x18e   :  { %v1168_v30 = vpop.f32.mrf.mxu2 }
 0x18f   :  { %v872_v33 = vunpack.c.l.b16 %v776_v15  ;;  %v1169_v34 = vadd.f32 %v2130_v55, %v1168_v30  ;;  %v1280_v25 = vpop.f32.mrf.mxu3 }
 0x191   :  { %v890_v36 = vpack.c.b16 %v872_v33, %v871_v31  ;;  %v1258_v37 = vadd.f32 %v2144_v39, %v1169_v34  ;;  %v551_v38 = vpop.f32.mrf.mxu0 }
 0x192   :  { %v640_v41 = vpop.f32.mrf.mxu1 }
 0x193   :  { %v1324_v42 = vmax.f32 %v1258_v37, 0.0  ;;  %1210 = vmatmul.bf16.gmra.mxu2 %v890_v36  ;;  %v641_v40 = vadd.f32 %v640_v41, %v551_v38 }
 0x195   :  { %v1855_v43 = vpack.c.bf16 %v1324_v42, %v1323_v35  ;;  %v777_v48 = vpack.c.bf16 %v641_v40, %v641_v40 }
 0x196   :  { %v1171_v45 = vpop.f32.mrf.mxu2 }
 0x197   :  { %1915 = vst [vmem:[#allocation11 + $0x20] sm:$0xff] %v1855_v43   ;;  %v1172_v28 = vadd.f32 %v2130_v55, %v1171_v45  ;;  %v873_v54 = vunpack.c.l.b16 %v777_v48 }
 0x199   :  { %v553_v46 = vpop.f32.mrf.mxu0  ;;  %v1261_v39 = vadd.f32 %v2149_v52, %v1172_v28 }
 0x19a   :  { %v642_v47 = vpop.f32.mrf.mxu1 }
 0x19b   :  { %v643_v50 = vadd.f32 %v642_v47, %v553_v46  ;;  %v1325_v49 = vmax.f32 %v1261_v39, 0.0 }
 0x19d   :  { %v778_v51 = vpack.c.bf16 %v643_v50, %v643_v50 }
 0x19e   :  { %v1173_v53 = vpop.f32.mrf.mxu2 }
 0x19f   :  { %v874_v57 = vunpack.c.l.b16 %v778_v51  ;;  %v1174_v58 = vadd.f32 %v2130_v55, %v1173_v53 }
 0x1a1   :  { %v891_v60 = vpack.c.b16 %v874_v57, %v873_v54  ;;  %v1263_v61 = vadd.f32 %v2152_v0, %v1174_v58  ;;  %v556_v62 = vpop.f32.mrf.mxu0 }
 0x1a2   :  { %v645_v63 = vpop.f32.mrf.mxu1 }
 0x1a3   :  { %v1326_v1 = vmax.f32 %v1263_v61, 0.0  ;;  %1215 = vmatmul.bf16.gmra.mxu2 %v891_v60  ;;  %v646_v4 = vadd.f32 %v645_v63, %v556_v62 }
 0x1a5   :  { %v1860_v2 = vpack.c.bf16 %v1326_v1, %v1325_v49  ;;  %v779_v52 = vpack.c.bf16 %v646_v4, %v646_v4 }
 0x1a6   :  { %v1176_v3 = vpop.f32.mrf.mxu2 }
 0x1a7   :  { %1916 = vst [vmem:[#allocation11 + $0x28] sm:$0xff] %v1860_v2   ;;  %v1177_v8 = vadd.f32 %v2130_v55, %v1176_v3  ;;  %v875_v12 = vunpack.c.l.b16 %v779_v52 }
 0x1a9   :  { %v558_v56 = vpop.f32.mrf.mxu0  ;;  %v1266_v0 = vadd.f32 %v2158_v14, %v1177_v8 }
 0x1aa   :  { %v647_v7 = vpop.f32.mrf.mxu1 }
 0x1ab   :  { %v648_v9 = vadd.f32 %v647_v7, %v558_v56  ;;  %v1327_v19 = vmax.f32 %v1266_v0, 0.0 }
 0x1ad   :  { %v780_v10 = vpack.c.bf16 %v648_v9, %v648_v9 }
 0x1ae   :  { %v1178_v11 = vpop.f32.mrf.mxu2 }
 0x1af   :  { %v876_v13 = vunpack.c.l.b16 %v780_v10  ;;  %v1179_v16 = vadd.f32 %v2130_v55, %v1178_v11 }
 0x1b1   :  { %v892_v17 = vpack.c.b16 %v876_v13, %v875_v12  ;;  %v1268_v18 = vadd.f32 %v1267_v27, %v1179_v16  ;;  %v1282_v27 = vpop.f32.mrf.mxu3 }
 0x1b3   :  { %v1328_v20 = vmax.f32 %v1268_v18, 0.0  ;;  %1220 = vmatmul.bf16.gmra.mxu2 %v892_v17 }
 0x1b5   :  { %v1865_v22 = vpack.c.bf16 %v1328_v20, %v1327_v19 }
 0x1b6   :  { %v1181_v23 = vpop.f32.mrf.mxu2 }
 0x1b7   :  { %1917 = vst [vmem:[#allocation11 + $0x30] sm:$0xff] %v1865_v22   ;;  %v1182_v24 = vadd.f32 %v2130_v55, %v1181_v23 }
 0x1b9   :  { %v1271_v26 = vadd.f32 %v1270_v44, %v1182_v24  ;;  %v1285_v41 = vpop.f32.mrf.mxu3 }
 0x1bb   :  { %v1329_v15 = vmax.f32 %v1271_v26, 0.0 }
 0x1be   :  { %v1183_v5 = vpop.f32.mrf.mxu2 }
 0x1bf   :  { %v1184_v29 = vadd.f32 %v2130_v55, %v1183_v5 }
 0x1c1   :  { %v1273_v14 = vadd.f32 %v1272_v59, %v1184_v29  ;;  %v1287_v40 = vpop.f32.mrf.mxu3 }
 0x1c3   :  { %v1330_v30 = vmax.f32 %v1273_v14, 0.0 }
 0x1c5   :  { %v1870_v31 = vpack.c.bf16 %v1330_v30, %v1329_v15 }
 0x1c6   :  { %v1186_v32 = vpop.f32.mrf.mxu2 }
 0x1c7   :  { %1918 = vst [vmem:[#allocation11 + $0x38] sm:$0xff] %v1870_v31   ;;  %v1187_v33 = vadd.f32 %v2130_v55, %v1186_v32 }
 0x1c9   :  { %v1276_v36 = vadd.f32 %v1275_v6, %v1187_v33  ;;  %v1290_v39 = vpop.f32.mrf.mxu3 }
 0x1cb   :  { %v1331_v35 = vmax.f32 %v1276_v36, 0.0 }
 0x1ce   :  { %v1188_v34 = vpop.f32.mrf.mxu2 }
 0x1cf   :  { %v1189_v37 = vadd.f32 %v2130_v55, %v1188_v34 }
 0x1d1   :  { %v1278_v38 = vadd.f32 %v1277_v21, %v1189_v37  ;;  %v1292_v61 = vpop.f32.mrf.mxu3 }
 0x1d3   :  { %v1332_v42 = vmax.f32 %v1278_v38, 0.0 }
 0x1d5   :  { %v1875_v43 = vpack.c.bf16 %v1332_v42, %v1331_v35 }
 0x1d6   :  { %v1191_v44 = vpop.f32.mrf.mxu2 }
 0x1d7   :  { %1919 = vst [vmem:[#allocation11 + $0x40] sm:$0xff] %v1875_v43   ;;  %v1192_v45 = vadd.f32 %v2130_v55, %v1191_v44 }
 0x1d9   :  { %v1281_v47 = vadd.f32 %v1280_v25, %v1192_v45  ;;  %v1295_v3 = vpop.f32.mrf.mxu3 }
 0x1db   :  { %v1333_v50 = vmax.f32 %v1281_v47, 0.0 }
 0x1de   :  { %v1193_v46 = vpop.f32.mrf.mxu2 }
 0x1df   :  { %v1194_v48 = vadd.f32 %v2130_v55, %v1193_v46 }
 0x1e1   :  { %v1283_v28 = vadd.f32 %v1282_v27, %v1194_v48  ;;  %v1297_v10 = vpop.f32.mrf.mxu3 }
 0x1e3   :  { %v1334_v51 = vmax.f32 %v1283_v28, 0.0 }
 0x1e5   :  { %v1880_v53 = vpack.c.bf16 %v1334_v51, %v1333_v50 }
 0x1e6   :  { %v1196_v54 = vpop.f32.mrf.mxu2 }
 0x1e7   :  { %1920 = vst [vmem:[#allocation11 + $0x48] sm:$0xff] %v1880_v53   ;;  %v1197_v57 = vadd.f32 %v2130_v55, %v1196_v54 }
 0x1e9   :  { %v1286_v59 = vadd.f32 %v1285_v41, %v1197_v57  ;;  %v1300_v16 = vpop.f32.mrf.mxu3 }
 0x1eb   :  { %v1335_v63 = vmax.f32 %v1286_v59, 0.0 }
 0x1ee   :  { %v1198_v58 = vpop.f32.mrf.mxu2 }
 0x1ef   :  { %v1199_v60 = vadd.f32 %v2130_v55, %v1198_v58 }
 0x1f1   :  { %v1288_v62 = vadd.f32 %v1287_v40, %v1199_v60  ;;  %v1302_v24 = vpop.f32.mrf.mxu3 }
 0x1f3   :  { %v1336_v49 = vmax.f32 %v1288_v62, 0.0 }
 0x1f5   :  { %v1885_v1 = vpack.c.bf16 %v1336_v49, %v1335_v63 }
 0x1f6   :  { %v1201_v2 = vpop.f32.mrf.mxu2 }
 0x1f7   :  { %1921 = vst [vmem:[#allocation11 + $0x50] sm:$0xff] %v1885_v1   ;;  %v1202_v4 = vadd.f32 %v2130_v55, %v1201_v2 }
 0x1f9   :  { %v1291_v56 = vadd.f32 %v1290_v39, %v1202_v4  ;;  %v1305_v15 = vpop.f32.mrf.mxu3 }
 0x1fb   :  { %v1337_v8 = vmax.f32 %v1291_v56, 0.0 }
 0x1fe   :  { %v1203_v6 = vpop.f32.mrf.mxu2 }
 0x1ff   :  { %v1204_v7 = vadd.f32 %v2130_v55, %v1203_v6 }
 0x201   :  { %v1293_v52 = vadd.f32 %v1292_v61, %v1204_v7  ;;  %v1307_v34 = vpop.f32.mrf.mxu3 }
 0x203   :  { %v1338_v9 = vmax.f32 %v1293_v52, 0.0 }
 0x205   :  { %v1890_v11 = vpack.c.bf16 %v1338_v9, %v1337_v8 }
 0x206   :  { %v1206_v12 = vpop.f32.mrf.mxu2 }
 0x207   :  { %1922 = vst [vmem:[#allocation11 + $0x58] sm:$0xff] %v1890_v11   ;;  %v1207_v0 = vadd.f32 %v2130_v55, %v1206_v12 }
 0x209   :  { %v1296_v17 = vadd.f32 %v1295_v3, %v1207_v0  ;;  %v1310_v44 = vpop.f32.mrf.mxu3 }
 0x20b   :  { %v1339_v20 = vmax.f32 %v1296_v17, 0.0 }
 0x20e   :  { %v1208_v13 = vpop.f32.mrf.mxu2 }
 0x20f   :  { %v1209_v18 = vadd.f32 %v2130_v55, %v1208_v13 }
 0x211   :  { %v1298_v19 = vadd.f32 %v1297_v10, %v1209_v18  ;;  %v1312_v28 = vpop.f32.mrf.mxu3 }
 0x213   :  { %v1340_v21 = vmax.f32 %v1298_v19, 0.0 }
 0x215   :  { %v1895_v22 = vpack.c.bf16 %v1340_v21, %v1339_v20 }
 0x216   :  { %v1211_v23 = vpop.f32.mrf.mxu2 }
 0x217   :  { %1923 = vst [vmem:[#allocation11 + $0x60] sm:$0xff] %v1895_v22   ;;  %v1212_v5 = vadd.f32 %v2130_v55, %v1211_v23 }
 0x219   :  { %v1301_v26 = vadd.f32 %v1300_v16, %v1212_v5 }
 0x21b   :  { %v1341_v30 = vmax.f32 %v1301_v26, 0.0 }
 0x21e   :  { %v1213_v25 = vpop.f32.mrf.mxu2 }
 0x21f   :  { %v1214_v29 = vadd.f32 %v2130_v55, %v1213_v25 }
 0x221   :  { %v1303_v14 = vadd.f32 %v1302_v24, %v1214_v29 }
 0x223   :  { %v1342_v31 = vmax.f32 %v1303_v14, 0.0 }
 0x225   :  { %v1900_v32 = vpack.c.bf16 %v1342_v31, %v1341_v30 }
 0x226   :  { %v1216_v27 = vpop.f32.mrf.mxu2 }
 0x227   :  { %1924 = vst [vmem:[#allocation11 + $0x68] sm:$0xff] %v1900_v32   ;;  %v1217_v33 = vadd.f32 %v2130_v55, %v1216_v27 }
 0x229   :  { %v1306_v37 = vadd.f32 %v1305_v15, %v1217_v33 }
 0x22b   :  { %v1343_v35 = vmax.f32 %v1306_v37, 0.0 }
 0x22e   :  { %v1218_v36 = vpop.f32.mrf.mxu2 }
 0x22f   :  { %v1219_v38 = vadd.f32 %v2130_v55, %v1218_v36 }
 0x231   :  { %v1308_v41 = vadd.f32 %v1307_v34, %v1219_v38 }
 0x233   :  { %v1344_v42 = vmax.f32 %v1308_v41, 0.0 }
 0x235   :  { %v1905_v43 = vpack.c.bf16 %v1344_v42, %v1343_v35 }
 0x236   :  { %v1221_v45 = vpop.f32.mrf.mxu2 }
 0x237   :  { %1925 = vst [vmem:[#allocation11 + $0x70] sm:$0xff] %v1905_v43   ;;  %v1222_v40 = vadd.f32 %v2130_v55, %v1221_v45 }
 0x239   :  { %v1311_v47 = vadd.f32 %v1310_v44, %v1222_v40 }
 0x23b   :  { %v1345_v51 = vmax.f32 %v1311_v47, 0.0 }
 0x23e   :  { %v1223_v46 = vpop.f32.mrf.mxu2 }
 0x23f   :  { %v1224_v48 = vadd.f32 %v2130_v55, %v1223_v46 }
 0x241   :  { %v1313_v50 = vadd.f32 %v1312_v28, %v1224_v48 }
 0x243   :  { %v1346_v53 = vmax.f32 %v1313_v50, 0.0 }
 0x245   :  { %v1910_v54 = vpack.c.bf16 %v1346_v53, %v1345_v51 }
 0x247   :  { %1926 = vst [vmem:[#allocation11 + $0x78] sm:$0xff] %v1910_v54  }
 0x248   :  { %1423 = dma.vmem_to_hbm [thread:$0]  %s1416_s15, 2048, %s1418_s18, [#allocation5], %s2066_s26, %s2066_s26, %s2067_s27  }
 0x249   :  { %2063 = dma.done.wait [#allocation5], 2048  }
 0x24a   :  { %2064 = vsyncadd [#allocation5], 4294965248 }
 0x24b   :  { %1428 = vsyncpa [#allocation4], 1 }
 0x24c   :  { %1429 = vsyncpa [#allocation7], 1 }
 0x24d   :  { %1430 = vsyncpa [#allocation10], 1 }
 0x24e   :  { %1431 = vsyncpa [#allocation5], 1 }

</bundles_post_ra>
